<compile_context>
chip_gen: v7x
topology: tpu7x:2x2x1
jax: 0.10.0
libtpu: 0.0.40
codegen_flags: <defaults>
</compile_context>

<pallas_src>
import functools

import jax
import jax.numpy as jnp
from jax.experimental import pallas as pl
from jax.experimental.pallas import tpu as pltpu


def _round_up(x, m):
    return ((x + m - 1) // m) * m


# ---------------------------------------------------------------------------
# Pallas kernels
# ---------------------------------------------------------------------------
def _matmul_kernel(a_ref, b_ref, bias_ref, o_ref, acc_ref, *, act):
    @pl.when(pl.program_id(2) == 0)
    def _():
        acc_ref[...] = jnp.zeros_like(acc_ref)

    acc_ref[...] += jnp.dot(a_ref[...], b_ref[...],
                            preferred_element_type=jnp.float32)

    @pl.when(pl.program_id(2) == pl.num_programs(2) - 1)
    def _():
        out = acc_ref[...] + bias_ref[...]
        if act == "relu":
            out = jnp.maximum(out, 0.0)
        o_ref[...] = out.astype(o_ref.dtype)


def _matmul_res_kernel(a_ref, b_ref, bias_ref, res_ref, o_ref, acc_ref, *, act):
    # Same as _matmul_kernel but with the residual add fused into the epilogue.
    @pl.when(pl.program_id(2) == 0)
    def _():
        acc_ref[...] = jnp.zeros_like(acc_ref)

    acc_ref[...] += jnp.dot(a_ref[...], b_ref[...],
                            preferred_element_type=jnp.float32)

    @pl.when(pl.program_id(2) == pl.num_programs(2) - 1)
    def _():
        out = acc_ref[...] + bias_ref[...] + res_ref[...]
        if act == "relu":
            out = jnp.maximum(out, 0.0)
        o_ref[...] = out.astype(o_ref.dtype)


def _avgpool_kernel(x_ref, o_ref):
    o_ref[...] = jnp.mean(x_ref[...], axis=1)


# ---------------------------------------------------------------------------
# Pallas wrappers
# ---------------------------------------------------------------------------
@functools.partial(jax.jit, static_argnames=("n", "act"))
def matmul_bias_act(a, b, bias, residual=None, *, n, act="none"):
    """act(a @ b + bias [+ residual]) on the MXU (bf16 operands, f32 accumulation).

    a:        (M, K) float (cast to bf16 here).
    b:        (Kp, Np) bf16, pre-padded to 128-multiples at init.
    bias:     (1, Np) f32, pre-padded.
    residual: optional (M, n) f32, fused into the epilogue before the activation.
    Returns (M, n) f32.
    """
    M, K = a.shape
    Kp, Np = b.shape
    tm = 256 if M >= 256 else _round_up(M, 8)
    Mp = _round_up(M, tm)
    tn = 256 if Np % 256 == 0 else 128
    tk = 256 if Kp % 256 == 0 else 128

    a_p = jnp.pad(a.astype(jnp.bfloat16), ((0, Mp - M), (0, Kp - K)))

    in_specs = [
        pl.BlockSpec((tm, tk), lambda i, j, k: (i, k)),
        pl.BlockSpec((tk, tn), lambda i, j, k: (k, j)),
        pl.BlockSpec((1, tn), lambda i, j, k: (0, j)),
    ]
    operands = [a_p, b, bias]
    if residual is None:
        kernel = functools.partial(_matmul_kernel, act=act)
    else:
        res_p = jnp.pad(residual.astype(jnp.float32),
                        ((0, Mp - M), (0, Np - n)))
        in_specs.append(pl.BlockSpec((tm, tn), lambda i, j, k: (i, j)))
        operands.append(res_p)
        kernel = functools.partial(_matmul_res_kernel, act=act)

    out = pl.pallas_call(
        kernel,
        out_shape=jax.ShapeDtypeStruct((Mp, Np), jnp.float32),
        grid_spec=pltpu.PrefetchScalarGridSpec(
            num_scalar_prefetch=0,
            grid=(Mp // tm, Np // tn, Kp // tk),
            in_specs=in_specs,
            out_specs=pl.BlockSpec((tm, tn), lambda i, j, k: (i, j)),
            scratch_shapes=[pltpu.VMEM((tm, tn), jnp.float32)],
        ),
        compiler_params=pltpu.CompilerParams(
            dimension_semantics=("parallel", "parallel", "arbitrary")),
    )(*operands)
    return out[:M, :n]


@functools.partial(jax.jit,
                   static_argnames=("kh", "kw", "n", "stride", "pad", "act"))
def conv2d_bn_act(x, wm, bias, residual=None, *, kh, kw, n, stride, pad, act):
    """Conv2d + folded BN (+ fused residual) (+ ReLU) via im2col + Pallas matmul.

    x: NHWC f32.  wm: (Kp, Np) bf16 with K-order (kh, kw, Cin).  bias: (1, Np) f32.
    residual: optional NHWC f32 with the output shape (fused add + act in the epilogue).
    """
    B, H, W, Cin = x.shape
    Ho = (H + 2 * pad - kh) // stride + 1
    Wo = (W + 2 * pad - kw) // stride + 1
    xb = x.astype(jnp.bfloat16)
    if kh == 1 and kw == 1 and pad == 0:
        if stride != 1:
            xb = xb[:, ::stride, ::stride, :]
        p = xb.reshape(B * Ho * Wo, Cin)
    else:
        xp = jnp.pad(xb, ((0, 0), (pad, pad), (pad, pad), (0, 0)))
        cols = []
        for di in range(kh):
            for dj in range(kw):
                cols.append(xp[:, di:di + stride * Ho:stride,
                               dj:dj + stride * Wo:stride, :])
        p = jnp.stack(cols, axis=3)              # (B,Ho,Wo,kh*kw,Cin): K-order (kh,kw,Cin)
        p = p.reshape(B * Ho * Wo, kh * kw * Cin)
    res2d = None if residual is None else residual.reshape(B * Ho * Wo, n)
    out = matmul_bias_act(p, wm, bias, res2d, n=n, act=act)
    return out.reshape(B, Ho, Wo, n)


@jax.jit
def maxpool_3x3_s2_p1(x):
    """PyTorch MaxPool2d(kernel=3, stride=2, padding=1), x: NHWC.

    Fused pairwise max over the 9 shifted strided views (XLA fuses this into a single
    pass; avoids writing/re-reading a 9x stacked copy through HBM)."""
    B, H, W, C = x.shape
    Ho = (H + 2 - 3) // 2 + 1
    Wo = (W + 2 - 3) // 2 + 1
    xp = jnp.pad(x, ((0, 0), (1, 1), (1, 1), (0, 0)),
                 constant_values=-jnp.inf)
    out = None
    for di in range(3):
        for dj in range(3):
            s = xp[:, di:di + 2 * Ho:2, dj:dj + 2 * Wo:2, :]
            out = s if out is None else jnp.maximum(out, s)
    return out


@jax.jit
def global_avgpool(x):
    """AdaptiveAvgPool2d((1,1)) + flatten, x: NHWC -> (B, C).

    Single-block load: fine for the (B, 1, 1, 2048) map this model produces at these
    shapes; would need H*W tiling for much larger activations."""
    B, H, W, C = x.shape
    xf = x.reshape(B, H * W, C)
    return pl.pallas_call(
        _avgpool_kernel,
        out_shape=jax.ShapeDtypeStruct((B, C), x.dtype),
        grid=(1,),
        in_specs=[pl.BlockSpec((B, H * W, C), lambda i: (0, 0, 0))],
        out_specs=pl.BlockSpec((B, C), lambda i: (0, 0)),
    )(xf)


# ---------------------------------------------------------------------------
# Deterministic parameter construction (ResNet50 + MLP head), BN folded.
# Weights are stored MXU-ready: (Kp, Np) bf16 matrices (K-order kh,kw,Cin) and
# (1, Np) f32 biases, padded to 128-multiples once here.
# ---------------------------------------------------------------------------
def init_params(key):
    counter = [0]

    def nk():
        counter[0] += 1
        return jax.random.fold_in(key, counter[0])

    def conv_bn(cout, cin, kh, kw):
        fan_in = cin * kh * kw
        w = jax.random.normal(nk(), (cout, cin, kh, kw), jnp.float32)
        w = w * (2.0 / fan_in) ** 0.5
        gamma = 1.0 + 0.1 * jax.random.normal(nk(), (cout,), jnp.float32)
        beta = 0.1 * jax.random.normal(nk(), (cout,), jnp.float32)
        mean = 0.1 * jax.random.normal(nk(), (cout,), jnp.float32)
        var = 1.0 + 0.1 * jnp.abs(jax.random.normal(nk(), (cout,), jnp.float32))
        scale = gamma / jnp.sqrt(var + 1e-5)          # eval-mode BN fold
        w = w * scale[:, None, None, None]
        b = beta - mean * scale
        wm = jnp.transpose(w, (2, 3, 1, 0)).reshape(kh * kw * cin, cout)
        K, N = wm.shape
        Kp, Np = _round_up(K, 128), _round_up(N, 128)
        wm = jnp.pad(wm, ((0, Kp - K), (0, Np - N))).astype(jnp.bfloat16)
        bp = jnp.pad(b, (0, Np - N)).reshape(1, Np)
        return {"w": wm, "b": bp, "kh": kh, "kw": kw, "n": cout}

    def linear(w, b):   # torch Linear weight layout (out, in)
        wm = w.T
        K, N = wm.shape
        Kp, Np = _round_up(K, 128), _round_up(N, 128)
        wm_p = jnp.pad(wm, ((0, Kp - K), (0, Np - N))).astype(jnp.bfloat16)
        bp = jnp.pad(b, (0, Np - N)).reshape(1, Np)
        return {"w": wm_p, "b": bp, "n": N}

    params = {"stem": conv_bn(64, 3, 7, 7)}

    layers_cfg = [(64, 3, 1), (128, 4, 2), (256, 6, 2), (512, 3, 2)]
    inplanes = 64
    layers = []
    for planes, nblocks, stride in layers_cfg:
        blocks = []
        for bi in range(nblocks):
            s = stride if bi == 0 else 1
            blk = {
                "conv1": conv_bn(planes, inplanes, 1, 1),
                "conv2": conv_bn(planes, planes, 3, 3),
                "conv3": conv_bn(planes * 4, planes, 1, 1),
                "stride": s,
            }
            if bi == 0:   # downsample branch (1x1 conv + BN)
                blk["down"] = conv_bn(planes * 4, inplanes, 1, 1)
            blocks.append(blk)
            inplanes = planes * 4
        layers.append(blocks)
    params["layers"] = layers

    dim_in = 2048  # resnet50 fc.in_features
    w1 = jax.random.normal(nk(), (dim_in // 2, dim_in), jnp.float32) / dim_in ** 0.5
    b1 = 0.01 * jax.random.normal(nk(), (dim_in // 2,), jnp.float32)
    w2 = jax.random.normal(nk(), (2, dim_in // 2), jnp.float32) / (dim_in // 2) ** 0.5
    b2 = 0.01 * jax.random.normal(nk(), (2,), jnp.float32)
    params["head"] = (linear(w1, b1), linear(w2, b2))
    return params


# ---------------------------------------------------------------------------
# Forward pass
# ---------------------------------------------------------------------------
def _apply_conv(x, cv, *, stride, pad, act, residual=None):
    return conv2d_bn_act(x, cv["w"], cv["b"], residual,
                         kh=cv["kh"], kw=cv["kw"], n=cv["n"],
                         stride=stride, pad=pad, act=act)


def ceresnet_forward(x_nchw, params):
    x = jnp.transpose(x_nchw, (0, 2, 3, 1)).astype(jnp.float32)  # NCHW -> NHWC

    # stem: conv7x7/2 + BN + ReLU + maxpool3x3/2
    x = _apply_conv(x, params["stem"], stride=2, pad=3, act="relu")
    x = maxpool_3x3_s2_p1(x)

    # bottleneck stages (torchvision ResNet-v1.5: stride on the 3x3 conv)
    for blocks in params["layers"]:
        for blk in blocks:
            s = blk["stride"]
            out = _apply_conv(x, blk["conv1"], stride=1, pad=0, act="relu")
            out = _apply_conv(out, blk["conv2"], stride=s, pad=1, act="relu")
            if "down" in blk:
                idn = _apply_conv(x, blk["down"], stride=s, pad=0, act="none")
            else:
                idn = x
            # conv3 + BN with residual add + ReLU fused into the matmul epilogue
            x = _apply_conv(out, blk["conv3"], stride=1, pad=0, act="relu",
                            residual=idn)

    feat = global_avgpool(x)           # encoder output; encoder.fc = Identity

    # head: Dropout(0.4) -> Linear(2048,1024) -> ReLU -> Dropout(0.4) -> Linear(1024,2)
    # TODO(synk): train-mode dropout not modeled (identity in eval mode).
    h1, h2 = params["head"]
    h = matmul_bias_act(feat, h1["w"], h1["b"], n=h1["n"], act="relu")
    logits = matmul_bias_act(h, h2["w"], h2["b"], n=h2["n"], act="none")
    return logits


if __name__ == "__main__":
    root = jax.random.PRNGKey(0)
    params = init_params(jax.random.fold_in(root, 1))
    # smallest input for which resnet50 spatial dims stay valid: 32x32, RGB
    x = jax.random.normal(jax.random.fold_in(root, 2), (2, 3, 32, 32), jnp.float32)
    out = ceresnet_forward(x, params)
    out = jax.block_until_ready(out)
    assert out.shape == (2, 2) and out.dtype == jnp.float32
    print("KERNEL_OK")
</pallas_src>

<mosaic_0001>
module attributes {stable_mosaic.version = 11 : i64} {
  func.func @_matmul_kernel(%arg0: i32, %arg1: i32, %arg2: i32, %arg3: memref<256x256xbf16, #tpu.memory_space<vmem>>, %arg4: memref<256x128xbf16, #tpu.memory_space<vmem>>, %arg5: memref<1x128xf32, #tpu.memory_space<vmem>>, %arg6: memref<256x128xf32, #tpu.memory_space<vmem>>, %arg7: memref<256x128xf32, #tpu.memory_space<vmem>>) attributes {dimension_semantics = [#tpu.dimension_semantics<parallel>, #tpu.dimension_semantics<parallel>, #tpu.dimension_semantics<arbitrary>], iteration_bounds = array<i64: 2, 1, 1>, scalar_prefetch = 0 : i64, scratch_operands = 1 : i64, tpu.core_type = #tpu.core_type<tc>, window_params = [{transform_indices = @transform_0, window_bounds = array<i64: 256, 256>}, {transform_indices = @transform_1, window_bounds = array<i64: 256, 128>}, {transform_indices = @transform_2, window_bounds = array<i64: 1, 128>}, {transform_indices = @transform_3, window_bounds = array<i64: 256, 128>}]} {
    %c0_i32 = arith.constant 0 : i32
    %0 = arith.cmpi eq, %arg2, %c0_i32 : i32
    %1 = arith.extui %0 : i1 to i32
    %c0_i32_0 = arith.constant 0 : i32
    %2 = arith.cmpi ne, %1, %c0_i32_0 : i32
    scf.if %2 {
      %cst_10 = arith.constant 0.000000e+00 : f32
      %12 = vector.broadcast %cst_10 : f32 to vector<256x128xf32>
      %c0_11 = arith.constant 0 : index
      %c0_12 = arith.constant 0 : index
      %13 = vector.load %arg7[%c0_11, %c0_12] : memref<256x128xf32, #tpu.memory_space<vmem>>, vector<256x128xf32>
      tpu.vector_store %arg7[%c0_11, %c0_12], %12 {strides = array<i32>} : memref<256x128xf32, #tpu.memory_space<vmem>>, vector<256x128xf32>,
    } else {
    }
    %c0 = arith.constant 0 : index
    %c0_1 = arith.constant 0 : index
    %3 = vector.load %arg7[%c0, %c0_1] : memref<256x128xf32, #tpu.memory_space<vmem>>, vector<256x128xf32>
    %c0_2 = arith.constant 0 : index
    %c0_3 = arith.constant 0 : index
    %4 = vector.load %arg3[%c0_2, %c0_3] : memref<256x256xbf16, #tpu.memory_space<vmem>>, vector<256x256xbf16>
    %c0_4 = arith.constant 0 : index
    %c0_5 = arith.constant 0 : index
    %5 = vector.load %arg4[%c0_4, %c0_5] : memref<256x128xbf16, #tpu.memory_space<vmem>>, vector<256x128xbf16>
    %cst = arith.constant dense<0.000000e+00> : vector<256x128xf32>
    %6 = tpu.matmul %4, %5, %cst {dimension_numbers = #tpu.dot_dimension_numbers<[1], [0], [0], [1], [0, 0, 1, 1], [], []>} : vector<256x256xbf16>, vector<256x128xbf16>, vector<256x128xf32> -> vector<256x128xf32>
    %7 = arith.addf %3, %6 : vector<256x128xf32>
    %c0_6 = arith.constant 0 : index
    %c0_7 = arith.constant 0 : index
    %8 = vector.load %arg7[%c0_6, %c0_7] : memref<256x128xf32, #tpu.memory_space<vmem>>, vector<256x128xf32>
    tpu.vector_store %arg7[%c0_6, %c0_7], %7 {strides = array<i32>} : memref<256x128xf32, #tpu.memory_space<vmem>>, vector<256x128xf32>,
    %c0_i32_8 = arith.constant 0 : i32
    %9 = arith.cmpi eq, %arg2, %c0_i32_8 : i32
    %10 = arith.extui %9 : i1 to i32
    %c0_i32_9 = arith.constant 0 : i32
    %11 = arith.cmpi ne, %10, %c0_i32_9 : i32
    scf.if %11 {
      %c0_10 = arith.constant 0 : index
      %c0_11 = arith.constant 0 : index
      %12 = vector.load %arg7[%c0_10, %c0_11] : memref<256x128xf32, #tpu.memory_space<vmem>>, vector<256x128xf32>
      %c0_12 = arith.constant 0 : index
      %c0_13 = arith.constant 0 : index
      %13 = vector.load %arg5[%c0_12, %c0_13] : memref<1x128xf32, #tpu.memory_space<vmem>>, vector<1x128xf32>
      %14 = vector.broadcast %13 : vector<1x128xf32> to vector<256x128xf32>
      %15 = arith.addf %12, %14 : vector<256x128xf32>
      %cst_14 = arith.constant 0.000000e+00 : f32
      %16 = vector.broadcast %cst_14 : f32 to vector<256x128xf32>
      %17 = arith.maximumf %15, %16 : vector<256x128xf32>
      %c0_15 = arith.constant 0 : index
      %c0_16 = arith.constant 0 : index
      %18 = vector.load %arg6[%c0_15, %c0_16] : memref<256x128xf32, #tpu.memory_space<vmem>>, vector<256x128xf32>
      tpu.vector_store %arg6[%c0_15, %c0_16], %17 {strides = array<i32>} : memref<256x128xf32, #tpu.memory_space<vmem>>, vector<256x128xf32>,
    } else {
    }
    return
  }
  func.func @transform_0(%arg0: i32, %arg1: i32, %arg2: i32) -> (i32, i32) {
    %c0_i32 = arith.constant 0 : i32
    return %arg0, %arg2 : i32, i32
  }
  func.func @transform_1(%arg0: i32, %arg1: i32, %arg2: i32) -> (i32, i32) {
    %c0_i32 = arith.constant 0 : i32
    return %arg2, %arg1 : i32, i32
  }
  func.func @transform_2(%arg0: i32, %arg1: i32, %arg2: i32) -> (i32, i32) {
    %c0_i32 = arith.constant 0 : i32
    %c0_i32_0 = arith.constant 0 : i32
    return %c0_i32, %arg1 : i32, i32
  }
  func.func @transform_3(%arg0: i32, %arg1: i32, %arg2: i32) -> (i32, i32) {
    %c0_i32 = arith.constant 0 : i32
    return %arg0, %arg1 : i32, i32
  }
}

</mosaic_0001>

<bundles_post_ra>
// kernel: matmul_bias_act.1
= control target key start
LH: loop header
LB: loop body
LE: loop exit
PB: predicated region body
PF: predicated region fallthrough
CT: control target
= control target key end

     0   :  { %s1457_s12 = smov 0   ;;  %s1459_s13 = smov 0   ;;  %s1650_s0 = inlined_call_operand.vmem [shape: bf16[512,256], index: 0, kind: input, shape index: {}]   ;;  %s1651_s1 = inlined_call_operand.vmem [shape: bf16[256,128], index: 1, kind: input, shape index: {}]   ;;  %s1652_s2 = inlined_call_operand.vmem [shape: f32[1,128], index: 2, kind: input, shape index: {}]   ;;  %s1653_s3 = inlined_call_operand.vmem [shape: f32[512,128], index: 3, kind: output, shape index: {}]  }
   0x1   :  { %s1461_s14 = smov 0  }
   0x2 LB: > { %s32_s15 = sadd.s32 1, %s1431_s13  ;;  %p1139_p0 = scmp.ge.s32.totalorder %s1435_s14, 1  ;;  %s1435_s14 = sphi %s1461_s14, %s13_s14   ;;  %s1431_s13 = sphi %s1459_s13, %s1655_s13   ;;  %s1427_s12 = sphi %s1457_s12, %s1654_s12  }
   0x3   : > { %p34_p1 = scmp.ge.s32.totalorder %s32_s15, 2  ;;  %p191_p2 = scmp.lt.s32.totalorder %s1435_s14, 3 }
   0x5   : > { %s1657_s15 = smov (%p34_p1, %s32_s15), 0  ;;  %p192_p3 = pnand %p1139_p0, %p191_p2 }
   0x6   : > { %v1349_v0 = vld [vmem:[%s1651_s1 + $0x40] sm:$0xff] (!%p192_p3)   ;;  %s1140_s18 = sshll.u32 (!%p192_p3), %s1427_s12, 5  ;;  %v1351_v2 = vld [vmem:[%s1651_s1 + $0x48] sm:$0xff] (!%p192_p3)   ;;  %v1353_v4 = vld [vmem:[%s1651_s1 + $0x50] sm:$0xff] (!%p192_p3)  }
   0x7   : > { %195 = sbr.rel (%p192_p3) target bundleno = 317 (0x13d), region = 32  ;;  %v1350_v1 = vld [vmem:[%s1651_s1] sm:$0xff] (!%p192_p3)   ;;  %1197 = vmatprep.subr.bf16.mxu0 (!%p192_p3), %v1349_v0  ;;  %1309 = vmatprep.subr.bf16.mxu1 (!%p192_p3), %v1349_v0  ;;  %v1352_v3 = vld [vmem:[%s1651_s1 + $0x8] sm:$0xff] (!%p192_p3)   ;;  %p236_p4 = scmp.lt.s32.totalorder (!%p192_p3), %s1140_s18, 63  ;;  %v1354_v5 = vld [vmem:[%s1651_s1 + $0x10] sm:$0xff] (!%p192_p3)  }
   0x8   : > { %1198 = vmatpush3.bf16.msra.mxu0 (!%p192_p3), %v1350_v1  ;;  %1317 = vmatpush3.bf16.msra.mxu1 (!%p192_p3), %v1350_v1  ;;  %v1355_v6 = vld [vmem:[%s1651_s1 + $0x58] sm:$0xff] (!%p192_p3)   ;;  %v1357_v8 = vld [vmem:[%s1651_s1 + $0x60] sm:$0xff] (!%p192_p3)   ;;  %v1359_v10 = vld [vmem:[%s1651_s1 + $0x68] sm:$0xff] (!%p192_p3)  }
   0x9   : > { %1199 = vmatprep.subr.bf16.mxu0 (!%p192_p3), %v1351_v2  ;;  %1310 = vmatprep.subr.bf16.mxu1 (!%p192_p3), %v1351_v2  ;;  %v1356_v7 = vld [vmem:[%s1651_s1 + $0x18] sm:$0xff] (!%p192_p3)   ;;  %v1358_v9 = vld [vmem:[%s1651_s1 + $0x20] sm:$0xff] (!%p192_p3)   ;;  %v1360_v13 = vld [vmem:[%s1651_s1 + $0x28] sm:$0xff] (!%p192_p3)  }
   0xa   : > { %v1361_v14 = vld [vmem:[%s1651_s1 + $0x70] sm:$0xff] (!%p192_p3)   ;;  %v1363_v16 = vld [vmem:[%s1651_s1 + $0x78] sm:$0xff] (!%p192_p3)   ;;  %v1568_v51 = vld [vmem:[%s1652_s2] ss:$0 sm:$0xff] (!%p192_p3) }
   0xb   : > { %v1362_v15 = vld [vmem:[%s1651_s1 + $0x30] sm:$0xff] (!%p192_p3)   ;;  %v1364_v17 = vld [vmem:[%s1651_s1 + $0x38] sm:$0xff] (!%p192_p3)  }
   0xc   : > { %1200 = vmatpush3.bf16.msra.mxu0 (!%p192_p3), %v1352_v3  ;;  %1318 = vmatpush3.bf16.msra.mxu1 (!%p192_p3), %v1352_v3 }
   0xd   : > { %1201 = vmatprep.subr.bf16.mxu0 (!%p192_p3), %v1353_v4  ;;  %1311 = vmatprep.subr.bf16.mxu1 (!%p192_p3), %v1353_v4 }
   0xe   : > { %s1659_s18 = smov (!%p236_p4, %s1140_s18), 63 }
   0xf   : > { %s1196_s6 = sshll.u32 %s1659_s18, 3 }
  0x10   : > { %1202 = vmatpush3.bf16.msra.mxu0 %v1354_v5  ;;  %1319 = vmatpush3.bf16.msra.mxu1 %v1354_v5  ;;  %s1510_s11 = scalar_lea.vmem %s1650_s0, %s1196_s6  ;;  %s1577_s8 = scalar_lea.vmem %s1653_s3, %s1196_s6 }
  0x11   : > { %1203 = vmatprep.subr.bf16.mxu0 %v1355_v6  ;;  %1312 = vmatprep.subr.bf16.mxu1 %v1355_v6  ;;  %v1367_v11 = vld [vmem:[%s1510_s11 + $0x4] ss:$8 sps:$4 sm:$0xff]   ;;  %v1365_v18 = vld [vmem:[%s1510_s11] ss:$8 sps:$4 sm:$0xff]   ;;  %v1371_v20 = vld [vmem:[%s1510_s11 + $0x14] ss:$8 sps:$4 sm:$0xff]  }
  0x12   : > { %v1370_v12 = vld [vmem:[%s1510_s11 + $0x84] ss:$8 sps:$4 sm:$0xff]   ;;  %688 = vmatprep.mubr.bf16.mxu0 %v1367_v11  ;;  %v1368_v19 = vld [vmem:[%s1510_s11 + $0x80] ss:$8 sps:$4 sm:$0xff]   ;;  %v1373_v21 = vld [vmem:[%s1510_s11 + $0x94] ss:$8 sps:$4 sm:$0xff]  }
  0x13   : > { %752 = vmatprep.mubr.bf16.mxu1 %v1370_v12  ;;  %v1375_v22 = vld [vmem:[%s1510_s11 + $0x10] ss:$8 sps:$4 sm:$0xff]   ;;  %v1377_v24 = vld [vmem:[%s1510_s11 + $0x24] ss:$8 sps:$4 sm:$0xff]   ;;  %v1381_v26 = vld [vmem:[%s1510_s11 + $0x20] ss:$8 sps:$4 sm:$0xff]  }
  0x14   : > { %1204 = vmatpush3.bf16.msra.mxu0 %v1356_v7  ;;  %1320 = vmatpush3.bf16.msra.mxu1 %v1356_v7  ;;  %v1376_v23 = vld [vmem:[%s1510_s11 + $0x90] ss:$8 sps:$4 sm:$0xff]   ;;  %v1379_v25 = vld [vmem:[%s1510_s11 + $0xa4] ss:$8 sps:$4 sm:$0xff]   ;;  %v1382_v27 = vld [vmem:[%s1510_s11 + $0xa0] ss:$8 sps:$4 sm:$0xff]  }
  0x15   : > { %1205 = vmatprep.subr.bf16.mxu0 %v1357_v8  ;;  %1313 = vmatprep.subr.bf16.mxu1 %v1357_v8  ;;  %v1383_v28 = vld [vmem:[%s1510_s11 + $0x34] ss:$8 sps:$4 sm:$0xff]   ;;  %v1387_v30 = vld [vmem:[%s1510_s11 + $0x30] ss:$8 sps:$4 sm:$0xff]   ;;  %v1389_v32 = vld [vmem:[%s1510_s11 + $0x44] ss:$8 sps:$4 sm:$0xff]  }
  0x16   : > { %v1385_v29 = vld [vmem:[%s1510_s11 + $0xb4] ss:$8 sps:$4 sm:$0xff]   ;;  %v1388_v31 = vld [vmem:[%s1510_s11 + $0xb0] ss:$8 sps:$4 sm:$0xff]   ;;  %v1391_v33 = vld [vmem:[%s1510_s11 + $0xc4] ss:$8 sps:$4 sm:$0xff]  }
  0x17   : > { %v1393_v34 = vld [vmem:[%s1510_s11 + $0x40] ss:$8 sps:$4 sm:$0xff]   ;;  %v1395_v36 = vld [vmem:[%s1510_s11 + $0x54] ss:$8 sps:$4 sm:$0xff]   ;;  %v1399_v38 = vld [vmem:[%s1510_s11 + $0x50] ss:$8 sps:$4 sm:$0xff]  }
  0x18   : > { %1206 = vmatpush3.bf16.msra.mxu0 %v1358_v9  ;;  %1321 = vmatpush3.bf16.msra.mxu1 %v1358_v9  ;;  %v1394_v35 = vld [vmem:[%s1510_s11 + $0xc0] ss:$8 sps:$4 sm:$0xff]   ;;  %v1397_v37 = vld [vmem:[%s1510_s11 + $0xd4] ss:$8 sps:$4 sm:$0xff]   ;;  %v1400_v39 = vld [vmem:[%s1510_s11 + $0xd0] ss:$8 sps:$4 sm:$0xff]  }
  0x19   : > { %1207 = vmatprep.subr.bf16.mxu0 %v1359_v10  ;;  %1314 = vmatprep.subr.bf16.mxu1 %v1359_v10  ;;  %v1401_v40 = vld [vmem:[%s1510_s11 + $0x64] ss:$8 sps:$4 sm:$0xff]   ;;  %v1405_v42 = vld [vmem:[%s1510_s11 + $0x60] ss:$8 sps:$4 sm:$0xff]   ;;  %v1407_v44 = vld [vmem:[%s1510_s11 + $0x74] ss:$8 sps:$4 sm:$0xff]  }
  0x1a   : > { %v1403_v41 = vld [vmem:[%s1510_s11 + $0xe4] ss:$8 sps:$4 sm:$0xff]   ;;  %v1406_v43 = vld [vmem:[%s1510_s11 + $0xe0] ss:$8 sps:$4 sm:$0xff]   ;;  %v1409_v45 = vld [vmem:[%s1510_s11 + $0xf4] ss:$8 sps:$4 sm:$0xff]  }
  0x1b   : > { %v1411_v46 = vld [vmem:[%s1510_s11 + $0x70] ss:$8 sps:$4 sm:$0xff]  }
  0x1c   : > { %1208 = vmatpush3.bf16.msra.mxu0 %v1360_v13  ;;  %1322 = vmatpush3.bf16.msra.mxu1 %v1360_v13  ;;  %v1412_v47 = vld [vmem:[%s1510_s11 + $0xf0] ss:$8 sps:$4 sm:$0xff]  }
  0x1d   : > { %1209 = vmatprep.subr.bf16.mxu0 %v1361_v14  ;;  %1315 = vmatprep.subr.bf16.mxu1 %v1361_v14 }
  0x20   : > { %1210 = vmatpush3.bf16.msra.mxu0 %v1362_v15  ;;  %1323 = vmatpush3.bf16.msra.mxu1 %v1362_v15 }
  0x21   : > { %1211 = vmatprep.subr.bf16.mxu0 %v1363_v16  ;;  %1316 = vmatprep.subr.bf16.mxu1 %v1363_v16 }
  0x24   : > { %1212 = vmatpush3.bf16.msra.mxu0 %v1364_v17  ;;  %1324 = vmatpush3.bf16.msra.mxu1 %v1364_v17 }
  0x27   : > { %689 = vmatmul.mubr.bf16.vlgmr.msra.gmra.mrb[0].mxu0 %v1365_v18  ;;  %753 = vmatmul.mubr.bf16.vlgmr.msra.gmra.mrb[0].mxu1 %v1368_v19 }
  0x28   : > { %696 = vmatprep.mubr.bf16.mxu0 %v1371_v20  ;;  %760 = vmatprep.mubr.bf16.mxu1 %v1373_v21 }
  0x2f   : > { %697 = vmatmul.mubr.bf16.gmra.mrb[4].mxu0 %v1375_v22  ;;  %761 = vmatmul.mubr.bf16.gmra.mrb[4].mxu1 %v1376_v23 }
  0x30   : > { %704 = vmatprep.mubr.bf16.mxu0 %v1377_v24  ;;  %768 = vmatprep.mubr.bf16.mxu1 %v1379_v25 }
  0x37   : > { %705 = vmatmul.mubr.bf16.gmra.mrb[8].mxu0 %v1381_v26  ;;  %769 = vmatmul.mubr.bf16.gmra.mrb[8].mxu1 %v1382_v27 }
  0x38   : > { %712 = vmatprep.mubr.bf16.mxu0 %v1383_v28  ;;  %776 = vmatprep.mubr.bf16.mxu1 %v1385_v29 }
  0x3f   : > { %713 = vmatmul.mubr.bf16.gmra.mrb[12].mxu0 %v1387_v30  ;;  %777 = vmatmul.mubr.bf16.gmra.mrb[12].mxu1 %v1388_v31 }
  0x40   : > { %720 = vmatprep.mubr.bf16.mxu0 %v1389_v32  ;;  %784 = vmatprep.mubr.bf16.mxu1 %v1391_v33 }
  0x47   : > { %721 = vmatmul.mubr.bf16.gmra.mrb[16].mxu0 %v1393_v34  ;;  %785 = vmatmul.mubr.bf16.gmra.mrb[16].mxu1 %v1394_v35 }
  0x48   : > { %728 = vmatprep.mubr.bf16.mxu0 %v1395_v36  ;;  %792 = vmatprep.mubr.bf16.mxu1 %v1397_v37 }
  0x4f   : > { %729 = vmatmul.mubr.bf16.gmra.mrb[20].mxu0 %v1399_v38  ;;  %793 = vmatmul.mubr.bf16.gmra.mrb[20].mxu1 %v1400_v39 }
  0x50   : > { %736 = vmatprep.mubr.bf16.mxu0 %v1401_v40  ;;  %800 = vmatprep.mubr.bf16.mxu1 %v1403_v41 }
  0x57   : > { %737 = vmatmul.mubr.bf16.gmra.mrb[24].mxu0 %v1405_v42  ;;  %801 = vmatmul.mubr.bf16.gmra.mrb[24].mxu1 %v1406_v43 }
  0x58   : > { %744 = vmatprep.mubr.bf16.mxu0 %v1407_v44  ;;  %808 = vmatprep.mubr.bf16.mxu1 %v1409_v45 }
  0x5f   : > { %745 = vmatmul.mubr.bf16.gmra.mrb[28].mxu0 %v1411_v46  ;;  %809 = vmatmul.mubr.bf16.gmra.mrb[28].mxu1 %v1412_v47 }
  0xfa   : > { %v1213_v48 = vpop.f32.mrb[0].mxu0  ;;  %v1261_v49 = vpop.f32.mrb[0].mxu1 }
  0xfb   : > { %v1214_v50 = vpop.f32.mrb[1].mxu0  ;;  %v1262_v52 = vpop.f32.mrb[1].mxu1 }
  0xfc   : > { %v1215_v53 = vadd.f32 %v1214_v50, %v1213_v48  ;;  %v1263_v54 = vadd.f32 %v1262_v52, %v1261_v49  ;;  %v1216_v55 = vpop.f32.mrb[2].mxu0  ;;  %v1264_v56 = vpop.f32.mrb[2].mxu1 }
  0xfd   : > { %v1217_v57 = vpop.f32.mrb[3].mxu0  ;;  %v1265_v58 = vpop.f32.mrb[3].mxu1 }
  0xfe   : > { %v923_v59 = vadd.f32 %v1215_v53, %v1568_v51  ;;  %v939_v60 = vadd.f32 %v1263_v54, %v1568_v51  ;;  %v1218_v61 = vadd.f32 %v1217_v57, %v1216_v55  ;;  %v1266_v62 = vadd.f32 %v1265_v58, %v1264_v56 }
 0x100   : > { %v955_v63 = vmax.f32 %v923_v59, 0.0  ;;  %v971_v0 = vmax.f32 %v939_v60, 0.0  ;;  %v924_v1 = vadd.f32 %v1218_v61, %v1568_v51  ;;  %v940_v2 = vadd.f32 %v1266_v62, %v1568_v51 }
 0x102   : > { %987 = vst [vmem:[%s1577_s8] sm:$0xff] %v955_v63  ;;  %1003 = vst [vmem:[%s1577_s8 + $0x80] sm:$0xff] %v971_v0  ;;  %v956_v3 = vmax.f32 %v924_v1, 0.0  ;;  %v972_v4 = vmax.f32 %v940_v2, 0.0  ;;  %v1219_v5 = vpop.f32.mrb[4].mxu0  ;;  %v1267_v6 = vpop.f32.mrb[4].mxu1 }
 0x103   : > { %v1220_v7 = vpop.f32.mrb[5].mxu0  ;;  %v1268_v8 = vpop.f32.mrb[5].mxu1 }
 0x104   : > { %988 = vst [vmem:[%s1577_s8 + $0x8] sm:$0xff] %v956_v3  ;;  %1004 = vst [vmem:[%s1577_s8 + $0x88] sm:$0xff] %v972_v4  ;;  %v1221_v9 = vadd.f32 %v1220_v7, %v1219_v5  ;;  %v1269_v10 = vadd.f32 %v1268_v8, %v1267_v6  ;;  %v1222_v11 = vpop.f32.mrb[6].mxu0  ;;  %v1270_v12 = vpop.f32.mrb[6].mxu1 }
 0x105   : > { %v1223_v13 = vpop.f32.mrb[7].mxu0  ;;  %v1271_v14 = vpop.f32.mrb[7].mxu1 }
 0x106   : > { %v925_v15 = vadd.f32 %v1221_v9, %v1568_v51  ;;  %v941_v16 = vadd.f32 %v1269_v10, %v1568_v51  ;;  %v1224_v17 = vadd.f32 %v1223_v13, %v1222_v11  ;;  %v1272_v18 = vadd.f32 %v1271_v14, %v1270_v12 }
 0x108   : > { %v957_v19 = vmax.f32 %v925_v15, 0.0  ;;  %v973_v20 = vmax.f32 %v941_v16, 0.0  ;;  %v926_v21 = vadd.f32 %v1224_v17, %v1568_v51  ;;  %v942_v22 = vadd.f32 %v1272_v18, %v1568_v51 }
 0x10a   : > { %989 = vst [vmem:[%s1577_s8 + $0x10] sm:$0xff] %v957_v19  ;;  %1005 = vst [vmem:[%s1577_s8 + $0x90] sm:$0xff] %v973_v20  ;;  %v958_v23 = vmax.f32 %v926_v21, 0.0  ;;  %v974_v24 = vmax.f32 %v942_v22, 0.0  ;;  %v1225_v25 = vpop.f32.mrb[8].mxu0  ;;  %v1273_v26 = vpop.f32.mrb[8].mxu1 }
 0x10b   : > { %v1226_v27 = vpop.f32.mrb[9].mxu0  ;;  %v1274_v28 = vpop.f32.mrb[9].mxu1 }
 0x10c   : > { %990 = vst [vmem:[%s1577_s8 + $0x18] sm:$0xff] %v958_v23  ;;  %1006 = vst [vmem:[%s1577_s8 + $0x98] sm:$0xff] %v974_v24  ;;  %v1227_v29 = vadd.f32 %v1226_v27, %v1225_v25  ;;  %v1275_v30 = vadd.f32 %v1274_v28, %v1273_v26  ;;  %v1228_v31 = vpop.f32.mrb[10].mxu0  ;;  %v1276_v32 = vpop.f32.mrb[10].mxu1 }
 0x10d   : > { %v1229_v33 = vpop.f32.mrb[11].mxu0  ;;  %v1277_v34 = vpop.f32.mrb[11].mxu1 }
 0x10e   : > { %v927_v35 = vadd.f32 %v1227_v29, %v1568_v51  ;;  %v943_v36 = vadd.f32 %v1275_v30, %v1568_v51  ;;  %v1230_v37 = vadd.f32 %v1229_v33, %v1228_v31  ;;  %v1278_v38 = vadd.f32 %v1277_v34, %v1276_v32 }
 0x110   : > { %v959_v39 = vmax.f32 %v927_v35, 0.0  ;;  %v975_v40 = vmax.f32 %v943_v36, 0.0  ;;  %v928_v41 = vadd.f32 %v1230_v37, %v1568_v51  ;;  %v944_v42 = vadd.f32 %v1278_v38, %v1568_v51 }
 0x112   : > { %991 = vst [vmem:[%s1577_s8 + $0x20] sm:$0xff] %v959_v39  ;;  %1007 = vst [vmem:[%s1577_s8 + $0xa0] sm:$0xff] %v975_v40  ;;  %v960_v43 = vmax.f32 %v928_v41, 0.0  ;;  %v976_v44 = vmax.f32 %v944_v42, 0.0  ;;  %v1231_v45 = vpop.f32.mrb[12].mxu0  ;;  %v1279_v46 = vpop.f32.mrb[12].mxu1 }
 0x113   : > { %v1232_v47 = vpop.f32.mrb[13].mxu0  ;;  %v1280_v48 = vpop.f32.mrb[13].mxu1 }
 0x114   : > { %992 = vst [vmem:[%s1577_s8 + $0x28] sm:$0xff] %v960_v43  ;;  %1008 = vst [vmem:[%s1577_s8 + $0xa8] sm:$0xff] %v976_v44  ;;  %v1233_v49 = vadd.f32 %v1232_v47, %v1231_v45  ;;  %v1281_v50 = vadd.f32 %v1280_v48, %v1279_v46  ;;  %v1234_v52 = vpop.f32.mrb[14].mxu0  ;;  %v1282_v53 = vpop.f32.mrb[14].mxu1 }
 0x115   : > { %v1235_v54 = vpop.f32.mrb[15].mxu0  ;;  %v1283_v55 = vpop.f32.mrb[15].mxu1 }
 0x116   : > { %v929_v56 = vadd.f32 %v1233_v49, %v1568_v51  ;;  %v945_v57 = vadd.f32 %v1281_v50, %v1568_v51  ;;  %v1236_v58 = vadd.f32 %v1235_v54, %v1234_v52  ;;  %v1284_v59 = vadd.f32 %v1283_v55, %v1282_v53 }
 0x118   : > { %v961_v60 = vmax.f32 %v929_v56, 0.0  ;;  %v977_v61 = vmax.f32 %v945_v57, 0.0  ;;  %v930_v62 = vadd.f32 %v1236_v58, %v1568_v51  ;;  %v946_v63 = vadd.f32 %v1284_v59, %v1568_v51 }
 0x11a   : > { %993 = vst [vmem:[%s1577_s8 + $0x30] sm:$0xff] %v961_v60  ;;  %1009 = vst [vmem:[%s1577_s8 + $0xb0] sm:$0xff] %v977_v61  ;;  %v962_v0 = vmax.f32 %v930_v62, 0.0  ;;  %v978_v1 = vmax.f32 %v946_v63, 0.0  ;;  %v1237_v2 = vpop.f32.mrb[16].mxu0  ;;  %v1285_v3 = vpop.f32.mrb[16].mxu1 }
 0x11b   : > { %v1238_v4 = vpop.f32.mrb[17].mxu0  ;;  %v1286_v5 = vpop.f32.mrb[17].mxu1 }
 0x11c   : > { %994 = vst [vmem:[%s1577_s8 + $0x38] sm:$0xff] %v962_v0  ;;  %1010 = vst [vmem:[%s1577_s8 + $0xb8] sm:$0xff] %v978_v1  ;;  %v1239_v6 = vadd.f32 %v1238_v4, %v1237_v2  ;;  %v1287_v7 = vadd.f32 %v1286_v5, %v1285_v3  ;;  %v1240_v8 = vpop.f32.mrb[18].mxu0  ;;  %v1288_v9 = vpop.f32.mrb[18].mxu1 }
 0x11d   : > { %v1241_v10 = vpop.f32.mrb[19].mxu0  ;;  %v1289_v11 = vpop.f32.mrb[19].mxu1 }
 0x11e   : > { %v931_v12 = vadd.f32 %v1239_v6, %v1568_v51  ;;  %v947_v13 = vadd.f32 %v1287_v7, %v1568_v51  ;;  %v1242_v14 = vadd.f32 %v1241_v10, %v1240_v8  ;;  %v1290_v15 = vadd.f32 %v1289_v11, %v1288_v9 }
 0x120   : > { %v963_v16 = vmax.f32 %v931_v12, 0.0  ;;  %v979_v17 = vmax.f32 %v947_v13, 0.0  ;;  %v932_v18 = vadd.f32 %v1242_v14, %v1568_v51  ;;  %v948_v19 = vadd.f32 %v1290_v15, %v1568_v51 }
 0x122   : > { %995 = vst [vmem:[%s1577_s8 + $0x40] sm:$0xff] %v963_v16  ;;  %1011 = vst [vmem:[%s1577_s8 + $0xc0] sm:$0xff] %v979_v17  ;;  %v964_v20 = vmax.f32 %v932_v18, 0.0  ;;  %v980_v21 = vmax.f32 %v948_v19, 0.0  ;;  %v1243_v22 = vpop.f32.mrb[20].mxu0  ;;  %v1291_v23 = vpop.f32.mrb[20].mxu1 }
 0x123   : > { %v1244_v24 = vpop.f32.mrb[21].mxu0  ;;  %v1292_v25 = vpop.f32.mrb[21].mxu1 }
 0x124   : > { %996 = vst [vmem:[%s1577_s8 + $0x48] sm:$0xff] %v964_v20  ;;  %1012 = vst [vmem:[%s1577_s8 + $0xc8] sm:$0xff] %v980_v21  ;;  %v1245_v26 = vadd.f32 %v1244_v24, %v1243_v22  ;;  %v1293_v27 = vadd.f32 %v1292_v25, %v1291_v23  ;;  %v1246_v28 = vpop.f32.mrb[22].mxu0  ;;  %v1294_v29 = vpop.f32.mrb[22].mxu1 }
 0x125   : > { %v1247_v30 = vpop.f32.mrb[23].mxu0  ;;  %v1295_v31 = vpop.f32.mrb[23].mxu1 }
 0x126   : > { %v933_v32 = vadd.f32 %v1245_v26, %v1568_v51  ;;  %v949_v33 = vadd.f32 %v1293_v27, %v1568_v51  ;;  %v1248_v34 = vadd.f32 %v1247_v30, %v1246_v28  ;;  %v1296_v35 = vadd.f32 %v1295_v31, %v1294_v29 }
 0x128   : > { %v965_v36 = vmax.f32 %v933_v32, 0.0  ;;  %v981_v37 = vmax.f32 %v949_v33, 0.0  ;;  %v934_v38 = vadd.f32 %v1248_v34, %v1568_v51  ;;  %v950_v39 = vadd.f32 %v1296_v35, %v1568_v51 }
 0x12a   : > { %997 = vst [vmem:[%s1577_s8 + $0x50] sm:$0xff] %v965_v36  ;;  %1013 = vst [vmem:[%s1577_s8 + $0xd0] sm:$0xff] %v981_v37  ;;  %v966_v40 = vmax.f32 %v934_v38, 0.0  ;;  %v982_v41 = vmax.f32 %v950_v39, 0.0  ;;  %v1249_v42 = vpop.f32.mrb[24].mxu0  ;;  %v1297_v43 = vpop.f32.mrb[24].mxu1 }
 0x12b   : > { %v1250_v44 = vpop.f32.mrb[25].mxu0  ;;  %v1298_v45 = vpop.f32.mrb[25].mxu1 }
 0x12c   : > { %998 = vst [vmem:[%s1577_s8 + $0x58] sm:$0xff] %v966_v40  ;;  %1014 = vst [vmem:[%s1577_s8 + $0xd8] sm:$0xff] %v982_v41  ;;  %v1251_v46 = vadd.f32 %v1250_v44, %v1249_v42  ;;  %v1299_v47 = vadd.f32 %v1298_v45, %v1297_v43  ;;  %v1252_v48 = vpop.f32.mrb[26].mxu0  ;;  %v1300_v49 = vpop.f32.mrb[26].mxu1 }
 0x12d   : > { %v1253_v50 = vpop.f32.mrb[27].mxu0  ;;  %v1301_v52 = vpop.f32.mrb[27].mxu1 }
 0x12e   : > { %v935_v53 = vadd.f32 %v1251_v46, %v1568_v51  ;;  %v951_v54 = vadd.f32 %v1299_v47, %v1568_v51  ;;  %v1254_v55 = vadd.f32 %v1253_v50, %v1252_v48  ;;  %v1302_v56 = vadd.f32 %v1301_v52, %v1300_v49 }
 0x130   : > { %v967_v57 = vmax.f32 %v935_v53, 0.0  ;;  %v983_v58 = vmax.f32 %v951_v54, 0.0  ;;  %v936_v59 = vadd.f32 %v1254_v55, %v1568_v51  ;;  %v952_v60 = vadd.f32 %v1302_v56, %v1568_v51 }
 0x132   : > { %999 = vst [vmem:[%s1577_s8 + $0x60] sm:$0xff] %v967_v57  ;;  %1015 = vst [vmem:[%s1577_s8 + $0xe0] sm:$0xff] %v983_v58  ;;  %v968_v61 = vmax.f32 %v936_v59, 0.0  ;;  %v984_v62 = vmax.f32 %v952_v60, 0.0  ;;  %v1255_v63 = vpop.f32.mrb[28].mxu0  ;;  %v1303_v0 = vpop.f32.mrb[28].mxu1 }
 0x133   : > { %v1256_v1 = vpop.f32.mrb[29].mxu0  ;;  %v1304_v2 = vpop.f32.mrb[29].mxu1 }
 0x134   : > { %1000 = vst [vmem:[%s1577_s8 + $0x68] sm:$0xff] %v968_v61  ;;  %1016 = vst [vmem:[%s1577_s8 + $0xe8] sm:$0xff] %v984_v62  ;;  %v1257_v3 = vadd.f32 %v1256_v1, %v1255_v63  ;;  %v1305_v4 = vadd.f32 %v1304_v2, %v1303_v0  ;;  %v1258_v5 = vpop.f32.mrb[30].mxu0  ;;  %v1306_v6 = vpop.f32.mrb[30].mxu1 }
 0x135   : > { %v1259_v7 = vpop.f32.mrb[31].mxu0  ;;  %v1307_v8 = vpop.f32.mrb[31].mxu1 }
 0x136   : > { %v937_v9 = vadd.f32 %v1257_v3, %v1568_v51  ;;  %v953_v10 = vadd.f32 %v1305_v4, %v1568_v51  ;;  %v1260_v11 = vadd.f32 %v1259_v7, %v1258_v5  ;;  %v1308_v12 = vadd.f32 %v1307_v8, %v1306_v6 }
 0x138   : > { %v969_v13 = vmax.f32 %v937_v9, 0.0  ;;  %v985_v14 = vmax.f32 %v953_v10, 0.0  ;;  %v938_v15 = vadd.f32 %v1260_v11, %v1568_v51  ;;  %v954_v16 = vadd.f32 %v1308_v12, %v1568_v51 }
 0x13a   : > { %1001 = vst [vmem:[%s1577_s8 + $0x70] sm:$0xff] %v969_v13  ;;  %1017 = vst [vmem:[%s1577_s8 + $0xf0] sm:$0xff] %v985_v14  ;;  %v970_v17 = vmax.f32 %v938_v15, 0.0  ;;  %v986_v18 = vmax.f32 %v954_v16, 0.0 }
 0x13c   : > { %1002 = vst [vmem:[%s1577_s8 + $0x78] sm:$0xff] %v970_v17  ;;  %1018 = vst [vmem:[%s1577_s8 + $0xf8] sm:$0xff] %v986_v18 }
 0x13d PF: > { %s13_s14 = sadd.s32 1, %s1435_s14   ;;  %s1654_s12 = smov %s1431_s13 }
 0x13e   : > { %p10_p5 = scmp.ge.s32.totalorder %s13_s14, 4   ;;  %s1655_s13 = smov %s1657_s15 }
 0x140   :  { %12 = sbr.rel (!%p10_p5) target bundleno = 2 (0x2), region = 76 }

</bundles_post_ra>
